<compile_context>
chip_gen: v7x
topology: tpu7x:2x2x1
jax: 0.10.0
libtpu: 0.0.40
codegen_flags: <defaults>
</compile_context>

<pallas_src>
import jax
import jax.numpy as jnp
from jax.experimental import pallas as pl
from jax.experimental.pallas import tpu as pltpu


def _round_up(n, m):
    return ((n + m - 1) // m) * m


def _cdiv(a, b):
    return -(-a // b)


def _make_resident_spec_factory():
    """Resident (constant-index) BlockSpec factory; single-buffered when the
    installed Pallas supports pipeline_mode=pl.Buffered(1)."""
    try:
        pl.BlockSpec((8, 128), lambda i: (0, 0), pipeline_mode=pl.Buffered(1))

        def factory(shape):
            return pl.BlockSpec(shape, lambda i: (0, 0),
                                pipeline_mode=pl.Buffered(1))

        return factory, 1
    except Exception:  # pragma: no cover - older Pallas without pipeline_mode
        def factory(shape):
            return pl.BlockSpec(shape, lambda i: (0, 0))

        return factory, 2


_resident_spec, _RESIDENT_BUFS = _make_resident_spec_factory()


def mlp_kernel(x_ref, w1_ref, b1_ref, w2_ref, b2_ref, w3_ref, b3_ref,
               y_ref, h2_ref):
    # MXU operands in mxu_dtype; accumulation, bias add and ReLU in f32.
    x = x_ref[...]                                              # (bm, K)

    h1 = jnp.dot(x, w1_ref[...], preferred_element_type=jnp.float32)
    h1 = jnp.maximum(h1 + b1_ref[...], 0.0)                     # f32

    h2 = jnp.dot(h1.astype(w2_ref.dtype), w2_ref[...],
                 preferred_element_type=jnp.float32)
    h2 = jnp.maximum(h2 + b2_ref[...], 0.0)                     # f32

    y = jnp.dot(h2.astype(w3_ref.dtype), w3_ref[...],
                preferred_element_type=jnp.float32)
    y = y + b3_ref[...]

    h2_ref[...] = h2.astype(h2_ref.dtype)
    y_ref[...] = y.astype(y_ref.dtype)


def mlp_forward(x_nchw, params, *, block_m=512,
                mxu_dtype=jnp.bfloat16, h2_dtype=jnp.float32):
    """Returns (y_pred, h_2) exactly like the PyTorch module's forward."""
    w1, b1, w2, b2, w3, b3 = params
    B = x_nchw.shape[0]
    x = x_nchw.reshape(B, -1)                       # x.view(batch_size, -1)
    if x.dtype != mxu_dtype:                        # cast directly, no f32 hop
        x = x.astype(mxu_dtype)

    input_dim = x.shape[1]
    hidden1, hidden2 = w1.shape[1], w2.shape[1]
    output_dim = w3.shape[1]

    # Lane-align every feature dim (multiple of 128).
    k_pad = _round_up(input_dim, 128)
    h1_pad = _round_up(hidden1, 128)      # 250 -> 256
    h2_pad = _round_up(hidden2, 128)      # 100 -> 128
    out_pad = _round_up(output_dim, 128)  # 10  -> 128

    # Batch tiling: balanced tiles of at most block_m rows.  On v7x ensure at
    # least 2 tiles (both TensorCores) whenever the batch can be split into
    # two >=8-row tiles; single-tile case uses block == full dim (no batch pad).
    n_m = max(1, _cdiv(B, block_m))
    if n_m == 1 and B >= 16:
        n_m = 2
    if n_m == 1:
        bm = B                                    # block == full array dim
    else:
        bm = _round_up(_cdiv(B, n_m), 8)
    b_pad = bm * n_m

    def pad2(a, rows, cols, dtype):
        if a.dtype != dtype:
            a = a.astype(dtype)
        pr, pc = rows - a.shape[0], cols - a.shape[1]
        if pr or pc:
            a = jnp.pad(a, ((0, pr), (0, pc)))
        return a

    # MXU operands in mxu_dtype; biases stay f32 (elementwise work in f32).
    x_p = pad2(x, b_pad, k_pad, mxu_dtype)
    w1_p = pad2(w1, k_pad, h1_pad, mxu_dtype)
    w2_p = pad2(w2, h1_pad, h2_pad, mxu_dtype)
    w3_p = pad2(w3, h2_pad, out_pad, mxu_dtype)
    b1_p = pad2(b1, 1, h1_pad, jnp.float32)
    b2_p = pad2(b2, 1, h2_pad, jnp.float32)
    b3_p = pad2(b3, 1, out_pad, jnp.float32)

    # Adaptive VMEM budget from the actual padded buffer sizes.
    bpe_mxu = jnp.dtype(mxu_dtype).itemsize
    bpe_h2 = jnp.dtype(h2_dtype).itemsize
    resident_bytes = _RESIDENT_BUFS * (
        (k_pad * h1_pad + h1_pad * h2_pad + h2_pad * out_pad) * bpe_mxu
        + 8 * (h1_pad + h2_pad + out_pad) * 4)        # biases (sublane-padded)
    streamed_bytes = 2 * bm * (k_pad * bpe_mxu + out_pad * 4 + h2_pad * bpe_h2)
    vmem_limit = int(1.25 * (resident_bytes + streamed_bytes)) + (2 << 20)
    vmem_limit = max(4 << 20, min(vmem_limit, 96 << 20))

    y_pad, h2_out_pad = pl.pallas_call(
        mlp_kernel,
        out_shape=(
            jax.ShapeDtypeStruct((b_pad, out_pad), jnp.float32),
            jax.ShapeDtypeStruct((b_pad, h2_pad), h2_dtype),
        ),
        grid_spec=pltpu.PrefetchScalarGridSpec(
            num_scalar_prefetch=0,
            grid=(n_m,),
            in_specs=[
                pl.BlockSpec((bm, k_pad), lambda i: (i, 0)),   # x tile streams
                _resident_spec((k_pad, h1_pad)), _resident_spec((1, h1_pad)),
                _resident_spec((h1_pad, h2_pad)), _resident_spec((1, h2_pad)),
                _resident_spec((h2_pad, out_pad)), _resident_spec((1, out_pad)),
            ],
            out_specs=(
                pl.BlockSpec((bm, out_pad), lambda i: (i, 0)),
                pl.BlockSpec((bm, h2_pad), lambda i: (i, 0)),
            ),
        ),
        compiler_params=pltpu.CompilerParams(
            dimension_semantics=("parallel",),   # shards batch tiles on v7x
            vmem_limit_bytes=vmem_limit,
        ),
    )(x_p, w1_p, b1_p, w2_p, b2_p, w3_p, b3_p)

    return y_pad[:B, :output_dim], h2_out_pad[:B, :hidden2]


def init_params(key, input_dim, output_dim, hidden1=250, hidden2=100):
    """Deterministic parameter init (PyTorch-Linear-like uniform bounds).
    Weights are stored as (in_features, out_features) = W^T of torch layout."""
    ks = jax.random.split(key, 6)

    def linear(kw, kb, fan_in, fan_out):
        bound = 1.0 / jnp.sqrt(fan_in)
        w = jax.random.uniform(kw, (fan_in, fan_out), jnp.float32, -bound, bound)
        b = jax.random.uniform(kb, (1, fan_out), jnp.float32, -bound, bound)
        return w, b

    w1, b1 = linear(ks[0], ks[1], input_dim, hidden1)
    w2, b2 = linear(ks[2], ks[3], hidden1, hidden2)
    w3, b3 = linear(ks[4], ks[5], hidden2, output_dim)
    return (w1, b1, w2, b2, w3, b3)


if __name__ == "__main__":
    key = jax.random.PRNGKey(0)
    k_x, k_p = jax.random.split(key)

    # Small NCHW input, e.g. a tiny image batch: (2, 4, 16, 16) -> input_dim 1024
    B, C, H, W = 2, 4, 16, 16
    input_dim = C * H * W
    output_dim = 10

    x = jax.random.normal(k_x, (B, C, H, W), dtype=jnp.float32)
    params = init_params(k_p, input_dim, output_dim)

    y_pred, h_2 = jax.jit(mlp_forward)(x, params)
    jax.block_until_ready((y_pred, h_2))

    # Reference checks.
    xf = x.reshape(B, -1)
    w1, b1, w2, b2, w3, b3 = params

    # (a) bf16-operand reference (mirrors the kernel's MXU path): tight check.
    def bf(a):
        return a.astype(jnp.bfloat16).astype(jnp.float32)

    h1_b = jnp.maximum(bf(xf) @ bf(w1) + b1, 0.0)
    h2_b = jnp.maximum(bf(h1_b) @ bf(w2) + b2, 0.0)
    y_b = bf(h2_b) @ bf(w3) + b3
    assert jnp.allclose(y_pred, y_b, atol=1e-3, rtol=1e-3)
    assert jnp.allclose(h_2, h2_b, atol=1e-3, rtol=1e-3)

    # (b) full-f32 reference (module semantics): loose check (bf16 MXU operands).
    h1_ref = jnp.maximum(xf @ w1 + b1, 0.0)
    h2_ref = jnp.maximum(h1_ref @ w2 + b2, 0.0)
    y_ref = h2_ref @ w3 + b3
    assert jnp.allclose(y_pred, y_ref, atol=5e-2, rtol=5e-2)
    assert jnp.allclose(h_2, h2_ref, atol=5e-2, rtol=5e-2)

    assert y_pred.shape == (B, output_dim) and h_2.shape == (B, 100)

    print("KERNEL_OK")
</pallas_src>

<mosaic_0001>
module attributes {stable_mosaic.version = 11 : i64} {
  func.func @mlp_kernel(%arg0: i32, %arg1: memref<2x1024xbf16, #tpu.memory_space<vmem>>, %arg2: memref<1024x256xbf16, #tpu.memory_space<vmem>>, %arg3: memref<1x256xf32, #tpu.memory_space<vmem>>, %arg4: memref<256x128xbf16, #tpu.memory_space<vmem>>, %arg5: memref<1x128xf32, #tpu.memory_space<vmem>>, %arg6: memref<128x128xbf16, #tpu.memory_space<vmem>>, %arg7: memref<1x128xf32, #tpu.memory_space<vmem>>, %arg8: memref<2x128xf32, #tpu.memory_space<vmem>>, %arg9: memref<2x128xf32, #tpu.memory_space<vmem>>) attributes {dimension_semantics = [#tpu.dimension_semantics<parallel>], iteration_bounds = array<i64: 1>, scalar_prefetch = 0 : i64, scratch_operands = 0 : i64, tpu.core_type = #tpu.core_type<tc>, window_params = [{transform_indices = @transform_0, window_bounds = array<i64: 2, 1024>}, {pipeline_mode = #tpu.pipeline_mode<synchronous>, transform_indices = @transform_1, window_bounds = array<i64: 1024, 256>}, {pipeline_mode = #tpu.pipeline_mode<synchronous>, transform_indices = @transform_2, window_bounds = array<i64: 1, 256>}, {pipeline_mode = #tpu.pipeline_mode<synchronous>, transform_indices = @transform_3, window_bounds = array<i64: 256, 128>}, {pipeline_mode = #tpu.pipeline_mode<synchronous>, transform_indices = @transform_4, window_bounds = array<i64: 1, 128>}, {pipeline_mode = #tpu.pipeline_mode<synchronous>, transform_indices = @transform_5, window_bounds = array<i64: 128, 128>}, {pipeline_mode = #tpu.pipeline_mode<synchronous>, transform_indices = @transform_6, window_bounds = array<i64: 1, 128>}, {transform_indices = @transform_7, window_bounds = array<i64: 2, 128>}, {transform_indices = @transform_8, window_bounds = array<i64: 2, 128>}]} {
    %c0 = arith.constant 0 : index
    %c0_0 = arith.constant 0 : index
    %0 = vector.load %arg1[%c0, %c0_0] : memref<2x1024xbf16, #tpu.memory_space<vmem>>, vector<2x1024xbf16>
    %c0_1 = arith.constant 0 : index
    %c0_2 = arith.constant 0 : index
    %1 = vector.load %arg2[%c0_1, %c0_2] : memref<1024x256xbf16, #tpu.memory_space<vmem>>, vector<1024x256xbf16>
    %cst = arith.constant dense<0.000000e+00> : vector<2x256xf32>
    %2 = tpu.matmul %0, %1, %cst {dimension_numbers = #tpu.dot_dimension_numbers<[1], [0], [0], [1], [0, 0, 1, 1], [], []>} : vector<2x1024xbf16>, vector<1024x256xbf16>, vector<2x256xf32> -> vector<2x256xf32>
    %c0_3 = arith.constant 0 : index
    %c0_4 = arith.constant 0 : index
    %3 = vector.load %arg3[%c0_3, %c0_4] : memref<1x256xf32, #tpu.memory_space<vmem>>, vector<1x256xf32>
    %4 = vector.broadcast %3 : vector<1x256xf32> to vector<2x256xf32>
    %5 = arith.addf %2, %4 : vector<2x256xf32>
    %cst_5 = arith.constant 0.000000e+00 : f32
    %6 = vector.broadcast %cst_5 : f32 to vector<2x256xf32>
    %7 = arith.maximumf %5, %6 : vector<2x256xf32>
    %8 = arith.truncf %7 : vector<2x256xf32> to vector<2x256xbf16>
    %c0_6 = arith.constant 0 : index
    %c0_7 = arith.constant 0 : index
    %9 = vector.load %arg4[%c0_6, %c0_7] : memref<256x128xbf16, #tpu.memory_space<vmem>>, vector<256x128xbf16>
    %cst_8 = arith.constant dense<0.000000e+00> : vector<2x128xf32>
    %10 = tpu.matmul %8, %9, %cst_8 {dimension_numbers = #tpu.dot_dimension_numbers<[1], [0], [0], [1], [0, 0, 1, 1], [], []>} : vector<2x256xbf16>, vector<256x128xbf16>, vector<2x128xf32> -> vector<2x128xf32>
    %c0_9 = arith.constant 0 : index
    %c0_10 = arith.constant 0 : index
    %11 = vector.load %arg5[%c0_9, %c0_10] : memref<1x128xf32, #tpu.memory_space<vmem>>, vector<1x128xf32>
    %12 = vector.broadcast %11 : vector<1x128xf32> to vector<2x128xf32>
    %13 = arith.addf %10, %12 : vector<2x128xf32>
    %cst_11 = arith.constant 0.000000e+00 : f32
    %14 = vector.broadcast %cst_11 : f32 to vector<2x128xf32>
    %15 = arith.maximumf %13, %14 : vector<2x128xf32>
    %16 = arith.truncf %15 : vector<2x128xf32> to vector<2x128xbf16>
    %c0_12 = arith.constant 0 : index
    %c0_13 = arith.constant 0 : index
    %17 = vector.load %arg6[%c0_12, %c0_13] : memref<128x128xbf16, #tpu.memory_space<vmem>>, vector<128x128xbf16>
    %cst_14 = arith.constant dense<0.000000e+00> : vector<2x128xf32>
    %18 = tpu.matmul %16, %17, %cst_14 {dimension_numbers = #tpu.dot_dimension_numbers<[1], [0], [0], [1], [0, 0, 1, 1], [], []>} : vector<2x128xbf16>, vector<128x128xbf16>, vector<2x128xf32> -> vector<2x128xf32>
    %c0_15 = arith.constant 0 : index
    %c0_16 = arith.constant 0 : index
    %19 = vector.load %arg7[%c0_15, %c0_16] : memref<1x128xf32, #tpu.memory_space<vmem>>, vector<1x128xf32>
    %20 = vector.broadcast %19 : vector<1x128xf32> to vector<2x128xf32>
    %21 = arith.addf %18, %20 : vector<2x128xf32>
    %c0_17 = arith.constant 0 : index
    %c0_18 = arith.constant 0 : index
    %22 = vector.load %arg9[%c0_17, %c0_18] : memref<2x128xf32, #tpu.memory_space<vmem>>, vector<2x128xf32>
    tpu.vector_store %arg9[%c0_17, %c0_18], %15 {strides = array<i32>} : memref<2x128xf32, #tpu.memory_space<vmem>>, vector<2x128xf32>,
    %c0_19 = arith.constant 0 : index
    %c0_20 = arith.constant 0 : index
    %23 = vector.load %arg8[%c0_19, %c0_20] : memref<2x128xf32, #tpu.memory_space<vmem>>, vector<2x128xf32>
    tpu.vector_store %arg8[%c0_19, %c0_20], %21 {strides = array<i32>} : memref<2x128xf32, #tpu.memory_space<vmem>>, vector<2x128xf32>,
    return
  }
  func.func @transform_0(%arg0: i32) -> (i32, i32) {
    %c0_i32 = arith.constant 0 : i32
    %c0_i32_0 = arith.constant 0 : i32
    return %arg0, %c0_i32 : i32, i32
  }
  func.func @transform_1(%arg0: i32) -> (i32, i32) {
    %c0_i32 = arith.constant 0 : i32
    %c0_i32_0 = arith.constant 0 : i32
    %c0_i32_1 = arith.constant 0 : i32
    return %c0_i32, %c0_i32_0 : i32, i32
  }
  func.func @transform_2(%arg0: i32) -> (i32, i32) {
    %c0_i32 = arith.constant 0 : i32
    %c0_i32_0 = arith.constant 0 : i32
    %c0_i32_1 = arith.constant 0 : i32
    return %c0_i32, %c0_i32_0 : i32, i32
  }
  func.func @transform_3(%arg0: i32) -> (i32, i32) {
    %c0_i32 = arith.constant 0 : i32
    %c0_i32_0 = arith.constant 0 : i32
    %c0_i32_1 = arith.constant 0 : i32
    return %c0_i32, %c0_i32_0 : i32, i32
  }
  func.func @transform_4(%arg0: i32) -> (i32, i32) {
    %c0_i32 = arith.constant 0 : i32
    %c0_i32_0 = arith.constant 0 : i32
    %c0_i32_1 = arith.constant 0 : i32
    return %c0_i32, %c0_i32_0 : i32, i32
  }
  func.func @transform_5(%arg0: i32) -> (i32, i32) {
    %c0_i32 = arith.constant 0 : i32
    %c0_i32_0 = arith.constant 0 : i32
    %c0_i32_1 = arith.constant 0 : i32
    return %c0_i32, %c0_i32_0 : i32, i32
  }
  func.func @transform_6(%arg0: i32) -> (i32, i32) {
    %c0_i32 = arith.constant 0 : i32
    %c0_i32_0 = arith.constant 0 : i32
    %c0_i32_1 = arith.constant 0 : i32
    return %c0_i32, %c0_i32_0 : i32, i32
  }
  func.func @transform_7(%arg0: i32) -> (i32, i32) {
    %c0_i32 = arith.constant 0 : i32
    %c0_i32_0 = arith.constant 0 : i32
    return %arg0, %c0_i32 : i32, i32
  }
  func.func @transform_8(%arg0: i32) -> (i32, i32) {
    %c0_i32 = arith.constant 0 : i32
    %c0_i32_0 = arith.constant 0 : i32
    return %arg0, %c0_i32 : i32, i32
  }
}

</mosaic_0001>

<bundles_post_ra>
// kernel: mlp_forward.1
= control target key start
LH: loop header
LB: loop body
LE: loop exit
PB: predicated region body
PF: predicated region fallthrough
CT: control target
= control target key end

     0   :  { %14 = vsyncpa [#allocation3], 0  ;;  %v162_v7 = vlaneseq  ;;  %v1843_v8 = vmov 1966171168   ;;  %s2418_s0 = inlined_call_operand.vmem [shape: bf16[2,1024], index: 0, kind: input, shape index: {}]   ;;  %s2419_s1 = inlined_call_operand.vmem [shape: bf16[1024,256], index: 1, kind: input, shape index: {}]   ;;  %s2420_s2 = inlined_call_operand.vmem [shape: f32[1,256], index: 2, kind: input, shape index: {}]   ;;  %s2421_s3 = inlined_call_operand.vmem [shape: bf16[256,128], index: 3, kind: input, shape index: {}]   ;;  %s2422_s4 = inlined_call_operand.vmem [shape: f32[1,128], index: 4, kind: input, shape index: {}]   ;;  %s2423_s5 = inlined_call_operand.vmem [shape: bf16[128,128], index: 5, kind: input, shape index: {}]   ;;  %s2424_s6 = inlined_call_operand.vmem [shape: f32[1,128], index: 6, kind: input, shape index: {}]   ;;  %s2425_s7 = inlined_call_operand.hbm [shape: f32[2,128], index: 7, kind: output, shape index: {0}]   ;;  %s2426_s8 = inlined_call_operand.hbm [shape: f32[2,128], index: 8, kind: output, shape index: {1}]  }
   0x1   :  { %v1578_v0 = vld [vmem:[%s2419_s1 + $0x104] ss:$8 sps:$4 sm:$0xff]   ;;  %v1580_v1 = vld [vmem:[%s2419_s1 + $0x100] ss:$8 sps:$4 sm:$0xff]   ;;  %v1581_v2 = vld [vmem:[%s2419_s1 + $0x114] ss:$8 sps:$4 sm:$0xff]   ;;  %v175_v9 = vunpack.c.l.s4 %v1843_v8 }
   0x2   :  { %911 = vmatprep.subr.bf16.mxu0 %v1578_v0  ;;  %v1583_v3 = vld [vmem:[%s2419_s1 + $0x110] ss:$8 sps:$4 sm:$0xff]   ;;  %v1584_v4 = vld [vmem:[%s2419_s1 + $0x124] ss:$8 sps:$4 sm:$0xff]   ;;  %v1586_v5 = vld [vmem:[%s2419_s1 + $0x120] ss:$8 sps:$4 sm:$0xff]  }
   0x3   :  { %912 = vmatpush1.bf16.msra.mxu0 %v1580_v1  ;;  %v1587_v6 = vld [vmem:[%s2419_s1 + $0x134] ss:$8 sps:$4 sm:$0xff]   ;;  %v1589_v10 = vld [vmem:[%s2419_s1 + $0x130] ss:$8 sps:$4 sm:$0xff]   ;;  %v1590_v11 = vld [vmem:[%s2419_s1 + $0x144] ss:$8 sps:$4 sm:$0xff]   ;;  %v176_v13 = vunpack.c.0.s8 %v175_v9 }
   0x4   :  { %913 = vmatprep.subr.bf16.mxu0 %v1581_v2  ;;  %v1920_v12 = vshrl.u32 %v162_v7, 7  ;;  %v1592_v14 = vld [vmem:[%s2419_s1 + $0x140] ss:$8 sps:$4 sm:$0xff]   ;;  %v1593_v15 = vld [vmem:[%s2419_s1 + $0x154] ss:$8 sps:$4 sm:$0xff]  }
   0x5   :  { %v1595_v17 = vld [vmem:[%s2419_s1 + $0x150] ss:$8 sps:$4 sm:$0xff]   ;;  %v1596_v18 = vld [vmem:[%s2419_s1 + $0x164] ss:$8 sps:$4 sm:$0xff]   ;;  %v1598_v22 = vld [vmem:[%s2419_s1 + $0x160] ss:$8 sps:$4 sm:$0xff]  }
   0x6   :  { %v1929_v16 = vsub.s32 %v176_v13, %v1920_v12  ;;  %v31_v19 = vld [vmem:[%s2418_s0] sm:$0xff]  ;;  %v1599_v23 = vld [vmem:[%s2419_s1 + $0x174] ss:$8 sps:$4 sm:$0xff]   ;;  %v1601_v28 = vld [vmem:[%s2419_s1 + $0x170] ss:$8 sps:$4 sm:$0xff]  }
   0x7   :  { %914 = vmatpush1.bf16.msra.mxu0 %v1583_v3  ;;  %v173_v20 = vcombine.high %v31_v19, %v31_v19  ;;  %v1602_v29 = vld [vmem:[%s2419_s1 + $0x184] ss:$8 sps:$4 sm:$0xff]   ;;  %v1604_v31 = vld [vmem:[%s2419_s1 + $0x180] ss:$8 sps:$4 sm:$0xff]   ;;  %v1605_v32 = vld [vmem:[%s2419_s1 + $0x194] ss:$8 sps:$4 sm:$0xff]  }
   0x8   :  { %915 = vmatprep.subr.bf16.mxu0 %v1584_v4  ;;  %v180_v21 = vrot.slane %v31_v19, %v1929_v16  ;;  %v1607_v33 = vld [vmem:[%s2419_s1 + $0x190] ss:$8 sps:$4 sm:$0xff]   ;;  %v1608_v34 = vld [vmem:[%s2419_s1 + $0x1a4] ss:$8 sps:$4 sm:$0xff]   ;;  %v1610_v35 = vld [vmem:[%s2419_s1 + $0x1a0] ss:$8 sps:$4 sm:$0xff]  }
   0x9   :  { %v1948_v25 = vrot.slane %v173_v20, %v1929_v16  ;;  %v1611_v36 = vld [vmem:[%s2419_s1 + $0x1b4] ss:$8 sps:$4 sm:$0xff]   ;;  %v1672_v37 = vld [vmem:[%s2419_s1 + $0x4] ss:$8 sps:$4 sm:$0xff]   ;;  %v1674_v38 = vld [vmem:[%s2419_s1] ss:$8 sps:$4 sm:$0xff]  }
   0xa   :  { %v188_v24 = vcombine.high %v180_v21, %v180_v21  ;;  %v1613_v39 = vld [vmem:[%s2419_s1 + $0x1b0] ss:$8 sps:$4 sm:$0xff]   ;;  %v1614_v40 = vld [vmem:[%s2419_s1 + $0x1c4] ss:$8 sps:$4 sm:$0xff]   ;;  %870 = vmatprep.subr.bf16.mxu1 %v1672_v37  ;;  %v1678_v41 = vld [vmem:[%s2419_s1 + $0x14] ss:$8 sps:$4 sm:$0xff]   ;;  %v2034_v55 = vrot.slane %v180_v21, %v1929_v16 }
   0xb   :  { %916 = vmatpush1.bf16.msra.mxu0 %v1586_v5  ;;  %v1953_v27 = vrot.slane %v1948_v25, %v1929_v16  ;;  %871 = vmatpush1.bf16.msra.mxu1 %v1674_v38  ;;  %v1680_v42 = vld [vmem:[%s2419_s1 + $0x10] ss:$8 sps:$4 sm:$0xff]   ;;  %v1616_v43 = vld [vmem:[%s2419_s1 + $0x1c0] ss:$8 sps:$4 sm:$0xff]   ;;  %v1684_v44 = vld [vmem:[%s2419_s1 + $0x24] ss:$8 sps:$4 sm:$0xff]   ;;  %v189_v58 = vcombine.high %v1948_v25, %v1948_v25 }
   0xc   :  { %917 = vmatprep.subr.bf16.mxu0 %v1587_v6  ;;  %v210_v26 = vrot.slane %v188_v24, %v1929_v16  ;;  %872 = vmatprep.subr.bf16.mxu1 %v1678_v41  ;;  %v1617_v45 = vld [vmem:[%s2419_s1 + $0x1d4] ss:$8 sps:$4 sm:$0xff]   ;;  %v1686_v46 = vld [vmem:[%s2419_s1 + $0x20] ss:$8 sps:$4 sm:$0xff]   ;;  %v1619_v48 = vld [vmem:[%s2419_s1 + $0x1d0] ss:$8 sps:$4 sm:$0xff]   ;;  %v218_v61 = vcombine.high %v2034_v55, %v2034_v55 }
   0xd   :  { %v1690_v47 = vld [vmem:[%s2419_s1 + $0x34] ss:$8 sps:$4 sm:$0xff]   ;;  %v1620_v49 = vld [vmem:[%s2419_s1 + $0x1e4] ss:$8 sps:$4 sm:$0xff]   ;;  %v1692_v50 = vld [vmem:[%s2419_s1 + $0x30] ss:$8 sps:$4 sm:$0xff]   ;;  %v2059_v0 = vrot.slane %v189_v58, %v1929_v16 }
   0xe   :  { %v220_v30 = vcombine.high %v210_v26, %v210_v26  ;;  %902 = vmatprep.mubr.bf16.mxu1 %v210_v26  ;;  %v1696_v51 = vld [vmem:[%s2419_s1 + $0x44] ss:$8 sps:$4 sm:$0xff]   ;;  %v1622_v52 = vld [vmem:[%s2419_s1 + $0x1e0] ss:$8 sps:$4 sm:$0xff]   ;;  %v1623_v53 = vld [vmem:[%s2419_s1 + $0x1f4] ss:$8 sps:$4 sm:$0xff]  }
   0xf   :  { %918 = vmatpush1.bf16.msra.mxu0 %v1589_v10  ;;  %873 = vmatpush1.bf16.msra.mxu1 %v1680_v42  ;;  %v1698_v54 = vld [vmem:[%s2419_s1 + $0x40] ss:$8 sps:$4 sm:$0xff]   ;;  %v1702_v56 = vld [vmem:[%s2419_s1 + $0x54] ss:$8 sps:$4 sm:$0xff]   ;;  %v1625_v57 = vld [vmem:[%s2419_s1 + $0x1f0] ss:$8 sps:$4 sm:$0xff]  }
  0x10   :  { %919 = vmatprep.subr.bf16.mxu0 %v1590_v11  ;;  %943 = vmatprep.mubr.bf16.mxu0 %v220_v30  ;;  %v1629_v59 = vld [vmem:[%s2419_s1 + $0x204] ss:$8 sps:$4 sm:$0xff]   ;;  %v1704_v60 = vld [vmem:[%s2419_s1 + $0x50] ss:$8 sps:$4 sm:$0xff]   ;;  %v1627_v63 = vld [vmem:[%s2419_s1 + $0x200] ss:$8 sps:$4 sm:$0xff]  }
  0x11   :  { %874 = vmatprep.subr.bf16.mxu1 %v1684_v44  ;;  %v1708_v62 = vld [vmem:[%s2419_s1 + $0x64] ss:$8 sps:$4 sm:$0xff]   ;;  %v1632_v1 = vld [vmem:[%s2419_s1 + $0x214] ss:$8 sps:$4 sm:$0xff]   ;;  %v1710_v2 = vld [vmem:[%s2419_s1 + $0x60] ss:$8 sps:$4 sm:$0xff]  }
  0x12   :  { %v1714_v3 = vld [vmem:[%s2419_s1 + $0x74] ss:$8 sps:$4 sm:$0xff]   ;;  %v1630_v4 = vld [vmem:[%s2419_s1 + $0x210] ss:$8 sps:$4 sm:$0xff]   ;;  %v1635_v5 = vld [vmem:[%s2419_s1 + $0x224] ss:$8 sps:$4 sm:$0xff]  }
  0x13   :  { %920 = vmatpush1.bf16.msra.mxu0 %v1592_v14  ;;  %875 = vmatpush1.bf16.msra.mxu1 %v1686_v46  ;;  %v1716_v6 = vld [vmem:[%s2419_s1 + $0x70] ss:$8 sps:$4 sm:$0xff]   ;;  %v1720_v7 = vld [vmem:[%s2419_s1 + $0x84] ss:$8 sps:$4 sm:$0xff]   ;;  %v1633_v8 = vld [vmem:[%s2419_s1 + $0x220] ss:$8 sps:$4 sm:$0xff]  }
  0x14   :  { %921 = vmatprep.subr.bf16.mxu0 %v1593_v15  ;;  %876 = vmatprep.subr.bf16.mxu1 %v1690_v47  ;;  %v1638_v9 = vld [vmem:[%s2419_s1 + $0x234] ss:$8 sps:$4 sm:$0xff]   ;;  %v1722_v10 = vld [vmem:[%s2419_s1 + $0x80] ss:$8 sps:$4 sm:$0xff]   ;;  %v1636_v13 = vld [vmem:[%s2419_s1 + $0x230] ss:$8 sps:$4 sm:$0xff]  }
  0x15   :  { %v1726_v11 = vld [vmem:[%s2419_s1 + $0x94] ss:$8 sps:$4 sm:$0xff]   ;;  %v1641_v14 = vld [vmem:[%s2419_s1 + $0x244] ss:$8 sps:$4 sm:$0xff]   ;;  %v1728_v15 = vld [vmem:[%s2419_s1 + $0x90] ss:$8 sps:$4 sm:$0xff]  }
  0x16   :  { %v1732_v16 = vld [vmem:[%s2419_s1 + $0xa4] ss:$8 sps:$4 sm:$0xff]   ;;  %v1734_v19 = vld [vmem:[%s2419_s1 + $0xa0] ss:$8 sps:$4 sm:$0xff]   ;;  %v1738_v20 = vld [vmem:[%s2419_s1 + $0xb4] ss:$8 sps:$4 sm:$0xff]  }
  0x17   :  { %922 = vmatpush1.bf16.msra.mxu0 %v1595_v17  ;;  %877 = vmatpush1.bf16.msra.mxu1 %v1692_v50  ;;  %v1639_v17 = vld [vmem:[%s2419_s1 + $0x240] ss:$8 sps:$4 sm:$0xff]   ;;  %v1642_v21 = vld [vmem:[%s2419_s1 + $0x250] ss:$8 sps:$4 sm:$0xff]   ;;  %v1744_v24 = vld [vmem:[%s2419_s1 + $0xc4] ss:$8 sps:$4 sm:$0xff]  }
  0x18   :  { %923 = vmatprep.subr.bf16.mxu0 %v1596_v18  ;;  %878 = vmatprep.subr.bf16.mxu1 %v1696_v51  ;;  %v1644_v18 = vld [vmem:[%s2419_s1 + $0x254] ss:$8 sps:$4 sm:$0xff]   ;;  %v1645_v25 = vld [vmem:[%s2419_s1 + $0x260] ss:$8 sps:$4 sm:$0xff]   ;;  %v1648_v30 = vld [vmem:[%s2419_s1 + $0x270] ss:$8 sps:$4 sm:$0xff]  }
  0x19   :  { %v1650_v26 = vld [vmem:[%s2419_s1 + $0x274] ss:$8 sps:$4 sm:$0xff]   ;;  %v1654_v38 = vld [vmem:[%s2419_s1 + $0x290] ss:$8 sps:$4 sm:$0xff]   ;;  %v1771_v41 = vld [vmem:[%s2421_s3 + $0x40] sm:$0xff]  }
  0x1a   :  { %v1762_v37 = vld [vmem:[%s2419_s1 + $0xf4] ss:$8 sps:$4 sm:$0xff]   ;;  %v1657_v42 = vld [vmem:[%s2419_s1 + $0x2a0] ss:$8 sps:$4 sm:$0xff]  }
  0x1b   :  { %924 = vmatpush1.bf16.msra.mxu0 %v1598_v22  ;;  %879 = vmatpush1.bf16.msra.mxu1 %v1698_v54  ;;  %v1647_v22 = vld [vmem:[%s2419_s1 + $0x264] ss:$8 sps:$4 sm:$0xff]  }
  0x1c   :  { %925 = vmatprep.subr.bf16.mxu0 %v1599_v23  ;;  %880 = vmatprep.subr.bf16.mxu1 %v1702_v56  ;;  %v1740_v23 = vld [vmem:[%s2419_s1 + $0xb0] ss:$8 sps:$4 sm:$0xff]   ;;  %v1772_v44 = vld [vmem:[%s2421_s3] sm:$0xff]  }
  0x1f   :  { %926 = vmatpush1.bf16.msra.mxu0 %v1601_v28  ;;  %881 = vmatpush1.bf16.msra.mxu1 %v1704_v60  ;;  %v1746_v28 = vld [vmem:[%s2419_s1 + $0xc0] ss:$8 sps:$4 sm:$0xff]  }
  0x20   :  { %927 = vmatprep.subr.bf16.mxu0 %v1602_v29  ;;  %882 = vmatprep.subr.bf16.mxu1 %v1708_v62  ;;  %v1750_v29 = vld [vmem:[%s2419_s1 + $0xd4] ss:$8 sps:$4 sm:$0xff]  }
  0x23   :  { %928 = vmatpush1.bf16.msra.mxu0 %v1604_v31  ;;  %883 = vmatpush1.bf16.msra.mxu1 %v1710_v2  ;;  %v1653_v31 = vld [vmem:[%s2419_s1 + $0x284] ss:$8 sps:$4 sm:$0xff]  }
  0x24   :  { %929 = vmatprep.subr.bf16.mxu0 %v1605_v32  ;;  %884 = vmatprep.subr.bf16.mxu1 %v1714_v3  ;;  %v1651_v32 = vld [vmem:[%s2419_s1 + $0x280] ss:$8 sps:$4 sm:$0xff]  }
  0x27   :  { %930 = vmatpush1.bf16.msra.mxu0 %v1607_v33  ;;  %885 = vmatpush1.bf16.msra.mxu1 %v1716_v6  ;;  %v1752_v33 = vld [vmem:[%s2419_s1 + $0xd0] ss:$8 sps:$4 sm:$0xff]  }
  0x28   :  { %931 = vmatprep.subr.bf16.mxu0 %v1608_v34  ;;  %886 = vmatprep.subr.bf16.mxu1 %v1720_v7  ;;  %v1756_v34 = vld [vmem:[%s2419_s1 + $0xe4] ss:$8 sps:$4 sm:$0xff]  }
  0x2b   :  { %932 = vmatpush1.bf16.msra.mxu0 %v1610_v35  ;;  %887 = vmatpush1.bf16.msra.mxu1 %v1722_v10  ;;  %v1656_v35 = vld [vmem:[%s2419_s1 + $0x294] ss:$8 sps:$4 sm:$0xff]  }
  0x2c   :  { %933 = vmatprep.subr.bf16.mxu0 %v1611_v36  ;;  %888 = vmatprep.subr.bf16.mxu1 %v1726_v11  ;;  %v1758_v36 = vld [vmem:[%s2419_s1 + $0xe0] ss:$8 sps:$4 sm:$0xff]  }
  0x2f   :  { %934 = vmatpush1.bf16.msra.mxu0 %v1613_v39  ;;  %889 = vmatpush1.bf16.msra.mxu1 %v1728_v15  ;;  %v1659_v39 = vld [vmem:[%s2419_s1 + $0x2a4] ss:$8 sps:$4 sm:$0xff]  }
  0x30   :  { %935 = vmatprep.subr.bf16.mxu0 %v1614_v40  ;;  %890 = vmatprep.subr.bf16.mxu1 %v1732_v16  ;;  %v1764_v40 = vld [vmem:[%s2419_s1 + $0xf0] ss:$8 sps:$4 sm:$0xff]  }
  0x33   :  { %936 = vmatpush1.bf16.msra.mxu0 %v1616_v43  ;;  %891 = vmatpush1.bf16.msra.mxu1 %v1734_v19  ;;  %v1662_v43 = vld [vmem:[%s2419_s1 + $0x2b4] ss:$8 sps:$4 sm:$0xff]  }
  0x34   :  { %937 = vmatprep.subr.bf16.mxu0 %v1617_v45  ;;  %892 = vmatprep.subr.bf16.mxu1 %v1738_v20 }
  0x37   :  { %938 = vmatpush1.bf16.msra.mxu0 %v1619_v48  ;;  %893 = vmatpush1.bf16.msra.mxu1 %v1740_v23 }
  0x38   :  { %939 = vmatprep.subr.bf16.mxu0 %v1620_v49  ;;  %894 = vmatprep.subr.bf16.mxu1 %v1744_v24 }
  0x3b   :  { %940 = vmatpush1.bf16.msra.mxu0 %v1622_v52  ;;  %895 = vmatpush1.bf16.msra.mxu1 %v1746_v28 }
  0x3c   :  { %941 = vmatprep.subr.bf16.mxu0 %v1623_v53  ;;  %896 = vmatprep.subr.bf16.mxu1 %v1750_v29 }
  0x3f   :  { %942 = vmatpush1.bf16.msra.mxu0 %v1625_v57  ;;  %897 = vmatpush1.bf16.msra.mxu1 %v1752_v33 }
  0x40   :  { %952 = vmatprep.subr.bf16.mxu0 %v1629_v59  ;;  %898 = vmatprep.subr.bf16.mxu1 %v1756_v34 }
  0x42   :  { %944 = vmatmul.mubr.bf16.vlgmr.msra.gmra.mrb[0].mxu0 %v218_v61 }
  0x43   :  { %953 = vmatpush1.bf16.msra.mxu0 %v1627_v63  ;;  %984 = vmatprep.mubr.bf16.mxu0 %v2059_v0 }
  0x44   :  { %954 = vmatprep.subr.bf16.mxu0 %v1632_v1  ;;  %899 = vmatpush1.bf16.msra.mxu1 %v1758_v36 }
  0x45   :  { %900 = vmatprep.subr.bf16.mxu1 %v1762_v37 }
  0x47   :  { %955 = vmatpush1.bf16.msra.mxu0 %v1630_v4 }
  0x48   :  { %956 = vmatprep.subr.bf16.mxu0 %v1635_v5  ;;  %901 = vmatpush1.bf16.msra.mxu1 %v1764_v40 }
  0x4b   :  { %957 = vmatpush1.bf16.msra.mxu0 %v1633_v8 }
  0x4c   :  { %958 = vmatprep.subr.bf16.mxu0 %v1638_v9 }
  0x4f   :  { %959 = vmatpush1.bf16.msra.mxu0 %v1636_v13 }
  0x50   :  { %960 = vmatprep.subr.bf16.mxu0 %v1641_v14 }
  0x53   :  { %961 = vmatpush1.bf16.msra.mxu0 %v1639_v17 }
  0x54   :  { %962 = vmatprep.subr.bf16.mxu0 %v1644_v18 }
  0x57   :  { %963 = vmatpush1.bf16.msra.mxu0 %v1642_v21 }
  0x58   :  { %964 = vmatprep.subr.bf16.mxu0 %v1647_v22 }
  0x5b   :  { %965 = vmatpush1.bf16.msra.mxu0 %v1645_v25 }
  0x5c   :  { %966 = vmatprep.subr.bf16.mxu0 %v1650_v26 }
  0x5f   :  { %967 = vmatpush1.bf16.msra.mxu0 %v1648_v30 }
  0x60   :  { %968 = vmatprep.subr.bf16.mxu0 %v1653_v31 }
  0x63   :  { %969 = vmatpush1.bf16.msra.mxu0 %v1651_v32 }
  0x64   :  { %970 = vmatprep.subr.bf16.mxu0 %v1656_v35 }
  0x67   :  { %971 = vmatpush1.bf16.msra.mxu0 %v1654_v38 }
  0x68   :  { %972 = vmatprep.subr.bf16.mxu0 %v1659_v39 }
  0x69   :  { %15 = vsyncpa [#allocation5], 0  ;;  %1510 = vmatprep.subr.bf16.mxu1 %v1771_v41  ;;  %v1773_v45 = vld [vmem:[%s2421_s3 + $0x48] sm:$0xff]   ;;  %v1660_v46 = vld [vmem:[%s2419_s1 + $0x2b0] ss:$8 sps:$4 sm:$0xff]   ;;  %903 = vmatmul.mubr.bf16.vlgmr.msra.gmra.mrb[0].mxu1 %v2034_v55  ;;  %v221_v1 = vcombine.high %v2059_v0, %v2059_v0  ;;  %v219_v33 = vcombine.high %v1953_v27, %v1953_v27  ;;  %v1844_v39 = vmov 0.0  }
  0x6a   :  { %v1665_v47 = vld [vmem:[%s2419_s1 + $0x2c4] ss:$8 sps:$4 sm:$0xff]   ;;  %1511 = vmatpush3.bf16.msra.mxu1 %v1772_v44  ;;  %v1775_v49 = vld [vmem:[%s2421_s3 + $0x50] sm:$0xff]   ;;  %v1663_v50 = vld [vmem:[%s2419_s1 + $0x2c0] ss:$8 sps:$4 sm:$0xff]   ;;  %v164_v44 = vsub.s32 0, %v1920_v12 }
  0x6b   :  { %973 = vmatpush1.bf16.msra.mxu0 %v1657_v42  ;;  %v1774_v48 = vld [vmem:[%s2421_s3 + $0x8] sm:$0xff]   ;;  %1512 = vmatprep.subr.bf16.mxu1 %v1773_v45  ;;  %v1668_v51 = vld [vmem:[%s2419_s1 + $0x2d4] ss:$8 sps:$4 sm:$0xff]   ;;  %v1666_v54 = vld [vmem:[%s2419_s1 + $0x2d0] ss:$8 sps:$4 sm:$0xff]   ;;  %vm1845_vm0 = vmmov 0  }
  0x6c   :  { %974 = vmatprep.subr.bf16.mxu0 %v1662_v43  ;;  %v1776_v52 = vld [vmem:[%s2421_s3 + $0x10] sm:$0xff]   ;;  %v1777_v53 = vld [vmem:[%s2421_s3 + $0x58] sm:$0xff]   ;;  %v1671_v55 = vld [vmem:[%s2419_s1 + $0x2e4] ss:$8 sps:$4 sm:$0xff]  }
  0x6d   :  { %v1778_v56 = vld [vmem:[%s2421_s3 + $0x18] sm:$0xff]   ;;  %v1779_v57 = vld [vmem:[%s2421_s3 + $0x60] sm:$0xff]   ;;  %v1781_v34 = vld [vmem:[%s2421_s3 + $0x68] sm:$0xff]  }
  0x6e   :  { %1513 = vmatpush3.bf16.msra.mxu1 %v1774_v48  ;;  %v1669_v58 = vld [vmem:[%s2419_s1 + $0x2e0] ss:$8 sps:$4 sm:$0xff]   ;;  %v1677_v59 = vld [vmem:[%s2419_s1 + $0x2f4] ss:$8 sps:$4 sm:$0xff]   ;;  %v1675_v61 = vld [vmem:[%s2419_s1 + $0x2f0] ss:$8 sps:$4 sm:$0xff]  }
  0x6f   :  { %975 = vmatpush1.bf16.msra.mxu0 %v1660_v46  ;;  %1514 = vmatprep.subr.bf16.mxu1 %v1775_v49  ;;  %v1780_v60 = vld [vmem:[%s2421_s3 + $0x20] sm:$0xff]   ;;  %v1689_v2 = vld [vmem:[%s2419_s1 + $0x314] ss:$8 sps:$4 sm:$0xff]   ;;  %v1687_v3 = vld [vmem:[%s2419_s1 + $0x310] ss:$8 sps:$4 sm:$0xff]   ;;  %v168_v46 = vsub.s32 1, %v1920_v12 }
  0x70   :  { %976 = vmatprep.subr.bf16.mxu0 %v1665_v47  ;;  %v1683_v62 = vld [vmem:[%s2419_s1 + $0x304] ss:$8 sps:$4 sm:$0xff]   ;;  %v1681_v63 = vld [vmem:[%s2419_s1 + $0x300] ss:$8 sps:$4 sm:$0xff]   ;;  %v1701_v5 = vld [vmem:[%s2419_s1 + $0x334] ss:$8 sps:$4 sm:$0xff]  }
  0x71   :  { %v1695_v4 = vld [vmem:[%s2419_s1 + $0x324] ss:$8 sps:$4 sm:$0xff]   ;;  %v1693_v0 = vld [vmem:[%s2419_s1 + $0x320] ss:$8 sps:$4 sm:$0xff]   ;;  %v1699_v6 = vld [vmem:[%s2419_s1 + $0x330] ss:$8 sps:$4 sm:$0xff]  }
  0x72   :  { %1515 = vmatpush3.bf16.msra.mxu1 %v1776_v52  ;;  %v1707_v7 = vld [vmem:[%s2419_s1 + $0x344] ss:$8 sps:$4 sm:$0xff]   ;;  %v1705_v8 = vld [vmem:[%s2419_s1 + $0x340] ss:$8 sps:$4 sm:$0xff]   ;;  %v1713_v9 = vld [vmem:[%s2419_s1 + $0x354] ss:$8 sps:$4 sm:$0xff]  }
  0x73   :  { %977 = vmatpush1.bf16.msra.mxu0 %v1663_v50  ;;  %1516 = vmatprep.subr.bf16.mxu1 %v1777_v53  ;;  %v1711_v10 = vld [vmem:[%s2419_s1 + $0x350] ss:$8 sps:$4 sm:$0xff]   ;;  %v1719_v11 = vld [vmem:[%s2419_s1 + $0x364] ss:$8 sps:$4 sm:$0xff]   ;;  %v1717_v13 = vld [vmem:[%s2419_s1 + $0x360] ss:$8 sps:$4 sm:$0xff]  }
  0x74   :  { %978 = vmatprep.subr.bf16.mxu0 %v1668_v51  ;;  %v1725_v14 = vld [vmem:[%s2419_s1 + $0x374] ss:$8 sps:$4 sm:$0xff]   ;;  %v1723_v15 = vld [vmem:[%s2419_s1 + $0x370] ss:$8 sps:$4 sm:$0xff]   ;;  %v1731_v16 = vld [vmem:[%s2419_s1 + $0x384] ss:$8 sps:$4 sm:$0xff]  }
  0x75   :  { %v1729_v17 = vld [vmem:[%s2419_s1 + $0x380] ss:$8 sps:$4 sm:$0xff]   ;;  %v1737_v18 = vld [vmem:[%s2419_s1 + $0x394] ss:$8 sps:$4 sm:$0xff]   ;;  %v1735_v19 = vld [vmem:[%s2419_s1 + $0x390] ss:$8 sps:$4 sm:$0xff]  }
  0x76   :  { %1517 = vmatpush3.bf16.msra.mxu1 %v1778_v56  ;;  %v1743_v20 = vld [vmem:[%s2419_s1 + $0x3a4] ss:$8 sps:$4 sm:$0xff]   ;;  %v1741_v21 = vld [vmem:[%s2419_s1 + $0x3a0] ss:$8 sps:$4 sm:$0xff]   ;;  %v1749_v22 = vld [vmem:[%s2419_s1 + $0x3b4] ss:$8 sps:$4 sm:$0xff]  }
  0x77   :  { %979 = vmatpush1.bf16.msra.mxu0 %v1666_v54  ;;  %1518 = vmatprep.subr.bf16.mxu1 %v1779_v57  ;;  %v1747_v23 = vld [vmem:[%s2419_s1 + $0x3b0] ss:$8 sps:$4 sm:$0xff]   ;;  %v1755_v24 = vld [vmem:[%s2419_s1 + $0x3c4] ss:$8 sps:$4 sm:$0xff]   ;;  %v1753_v25 = vld [vmem:[%s2419_s1 + $0x3c0] ss:$8 sps:$4 sm:$0xff]  }
  0x78   :  { %980 = vmatprep.subr.bf16.mxu0 %v1671_v55  ;;  %v1761_v26 = vld [vmem:[%s2419_s1 + $0x3d4] ss:$8 sps:$4 sm:$0xff]   ;;  %v1759_v28 = vld [vmem:[%s2419_s1 + $0x3d0] ss:$8 sps:$4 sm:$0xff]   ;;  %v1767_v29 = vld [vmem:[%s2419_s1 + $0x3e4] ss:$8 sps:$4 sm:$0xff]  }
  0x79   :  { %v1765_v30 = vld [vmem:[%s2419_s1 + $0x3e0] ss:$8 sps:$4 sm:$0xff]   ;;  %v1770_v31 = vld [vmem:[%s2419_s1 + $0x3f4] ss:$8 sps:$4 sm:$0xff]   ;;  %v1768_v32 = vld [vmem:[%s2419_s1 + $0x3f0] ss:$8 sps:$4 sm:$0xff]  }
  0x7a   :  { %1519 = vmatpush3.bf16.msra.mxu1 %v1780_v60  ;;  %v1782_v35 = vld [vmem:[%s2421_s3 + $0x28] sm:$0xff]   ;;  %v1783_v36 = vld [vmem:[%s2421_s3 + $0x70] sm:$0xff]   ;;  %v1785_v37 = vld [vmem:[%s2421_s3 + $0x78] sm:$0xff]   ;;  %s1846_s1 = smov [#allocation4]  }
  0x7b   :  { %981 = vmatpush1.bf16.msra.mxu0 %v1669_v58  ;;  %1520 = vmatprep.subr.bf16.mxu1 %v1781_v34  ;;  %v1786_v38 = vld [vmem:[%s2421_s3 + $0x38] sm:$0xff]   ;;  %v160_v45 = vld [vmem:[%s2420_s2] sm:$0x3]  ;;  %v1788_v12 = vld [vmem:[%s2423_s5 + $0x8] sm:$0xff]   ;;  %s1344_s14 = sshll.u32 %s1846_s1, 4  ;;  %s1345_s14 = int_to_ptr.vmem [resolvable:$true] %s1344_s14 }
  0x7c   :  { %982 = vmatprep.subr.bf16.mxu0 %v1677_v59  ;;  %v165_v47 = vrot.slane %v160_v45, %v164_v44  ;;  %v169_v48 = vrot.slane %v160_v45, %v168_v46  ;;  %v1787_v60 = vld [vmem:[%s2423_s5] sm:$0xff]   ;;  %p1800_p1 = scmp.lt.s32.totalorder %s1345_s14, %s1345_s14 }
  0x7e   :  { %1521 = vmatpush3.bf16.msra.mxu1 %v1782_v35 }
  0x7f   :  { %983 = vmatpush1.bf16.msra.mxu0 %v1675_v61  ;;  %1522 = vmatprep.subr.bf16.mxu1 %v1783_v36 }
  0x80   :  { %993 = vmatprep.subr.bf16.mxu0 %v1683_v62  ;;  %v1789_v62 = vld [vmem:[%s2423_s5 + $0x10] sm:$0xff]  }
  0x82   :  { %985 = vmatmul.mubr.bf16.vlgmr.msra.gmra.mrb[0].mxu0 %v1953_v27  ;;  %v1784_v27 = vld [vmem:[%s2421_s3 + $0x30] sm:$0xff]  }
  0x83   :  { %994 = vmatpush1.bf16.msra.mxu0 %v1681_v63  ;;  %1025 = vmatprep.mubr.bf16.mxu0 %v221_v1  ;;  %v1790_v63 = vld [vmem:[%s2423_s5 + $0x18] sm:$0xff]   ;;  %v1791_v1 = vld [vmem:[%s2423_s5 + $0x20] sm:$0xff]  }
  0x84   :  { %995 = vmatprep.subr.bf16.mxu0 %v1689_v2  ;;  %1523 = vmatpush3.bf16.msra.mxu1 %v1784_v27  ;;  %v1792_v2 = vld [vmem:[%s2423_s5 + $0x28] sm:$0xff]  }
  0x85   :  { %1524 = vmatprep.subr.bf16.mxu1 %v1785_v37 }
  0x87   :  { %996 = vmatpush1.bf16.msra.mxu0 %v1687_v3  ;;  %v1793_v3 = vld [vmem:[%s2423_s5 + $0x30] sm:$0xff]  }
  0x88   :  { %997 = vmatprep.subr.bf16.mxu0 %v1695_v4  ;;  %1525 = vmatpush3.bf16.msra.mxu1 %v1786_v38  ;;  %v1794_v4 = vld [vmem:[%s2423_s5 + $0x38] sm:$0xff]   ;;  %s1795_s5 = scalar_lea.vmem %s1345_s14, 32 }
  0x89   :  { %1541 = vmatprep.subr.bf16.mxu1 %v1844_v39  ;;  %p1796_p0 = scmp.ne.s32.totalorder %s1345_s14, %s1795_s5  ;;  %p1801_p2 = scmp.lt.s32.totalorder %s1795_s5, %s1795_s5 }
  0x8b   :  { %998 = vmatpush1.bf16.msra.mxu0 %v1693_v0  ;;  %p1802_p3 = por %p1801_p2, %p1800_p1 }
  0x8c   :  { %999 = vmatprep.subr.bf16.mxu0 %v1701_v5  ;;  %v1484_v5 = vld [vmem:[%s2422_s4] ss:$0 sm:$0xff] }
  0x8d   :  { %p1803_p4 = pnand %p1802_p3, %p1796_p0 }
  0x8f   :  { %1000 = vmatpush1.bf16.msra.mxu0 %v1699_v6 }
  0x90   :  { %1001 = vmatprep.subr.bf16.mxu0 %v1707_v7 }
  0x93   :  { %1002 = vmatpush1.bf16.msra.mxu0 %v1705_v8 }
  0x94   :  { %1003 = vmatprep.subr.bf16.mxu0 %v1713_v9 }
  0x97   :  { %1004 = vmatpush1.bf16.msra.mxu0 %v1711_v10 }
  0x98   :  { %1005 = vmatprep.subr.bf16.mxu0 %v1719_v11 }
  0x9b   :  { %1006 = vmatpush1.bf16.msra.mxu0 %v1717_v13 }
  0x9c   :  { %1007 = vmatprep.subr.bf16.mxu0 %v1725_v14 }
  0x9f   :  { %1008 = vmatpush1.bf16.msra.mxu0 %v1723_v15 }
  0xa0   :  { %1009 = vmatprep.subr.bf16.mxu0 %v1731_v16 }
  0xa3   :  { %1010 = vmatpush1.bf16.msra.mxu0 %v1729_v17 }
  0xa4   :  { %1011 = vmatprep.subr.bf16.mxu0 %v1737_v18 }
  0xa7   :  { %1012 = vmatpush1.bf16.msra.mxu0 %v1735_v19 }
  0xa8   :  { %1013 = vmatprep.subr.bf16.mxu0 %v1743_v20 }
  0xab   :  { %1014 = vmatpush1.bf16.msra.mxu0 %v1741_v21 }
  0xac   :  { %1015 = vmatprep.subr.bf16.mxu0 %v1749_v22 }
  0xaf   :  { %1016 = vmatpush1.bf16.msra.mxu0 %v1747_v23 }
  0xb0   :  { %1017 = vmatprep.subr.bf16.mxu0 %v1755_v24 }
  0xb3   :  { %1018 = vmatpush1.bf16.msra.mxu0 %v1753_v25 }
  0xb4   :  { %1019 = vmatprep.subr.bf16.mxu0 %v1761_v26 }
  0xb7   :  { %1020 = vmatpush1.bf16.msra.mxu0 %v1759_v28 }
  0xb8   :  { %1021 = vmatprep.subr.bf16.mxu0 %v1767_v29 }
  0xbb   :  { %1022 = vmatpush1.bf16.msra.mxu0 %v1765_v30 }
  0xbc   :  { %1023 = vmatprep.subr.bf16.mxu0 %v1770_v31 }
  0xbf   :  { %1024 = vmatpush1.bf16.msra.mxu0 %v1768_v32 }
  0xc2   :  { %1026 = vmatmul.mubr.bf16.vlgmr.msra.gmra.mrb[0].mxu0 %v219_v33 }
 0x13c   :  { %v904_v40 = vpop.f32.mrb[0].mxu1 }
 0x13d   :  { %v906_v41 = vpop.f32.mrb[1].mxu1  ;;  %v905_v49 = vadd.f32 %v904_v40, %v165_v47 }
 0x13e   :  { %v908_v42 = vpop.f32.mrb[2].mxu1  ;;  %v907_v50 = vadd.f32 %v906_v41, %v169_v48 }
 0x13f   :  { %v909_v43 = vpop.f32.mrb[3].mxu1 }
 0x195   :  { %v1027_v51 = vpop.f32.mrb[0].mxu0 }
 0x196   :  { %v1562_v52 = vadd.f32 %v1027_v51, %v905_v49  ;;  %v1029_v53 = vpop.f32.mrb[1].mxu0 }
 0x197   :  { %v1564_v54 = vadd.f32 %v1029_v53, %v907_v50  ;;  %v1031_v55 = vpop.f32.mrb[2].mxu0 }
 0x198   :  { %v1034_v56 = vmax.f32 %v1562_v52, 0.0  ;;  %v1032_v57 = vpop.f32.mrb[3].mxu0 }
 0x199   :  { %v1035_v58 = vmax.f32 %v1564_v54, 0.0 }
 0x19a   :  { %v1036_v61 = vpack.c.bf16 %v1034_v56, %v1034_v56 }
 0x19b   :  { %v1037_v59 = vpack.c.bf16 %v1035_v58, %v1035_v58 }
 0x19d   :  { %1205 = vmatprep.mubr.bf16.mxu1 %v1037_v59 }
 0x19e   :  { %1206 = vmatmul.mubr.bf16.vlgmr.msra.gmra.mrb[4].mxu1 %v1036_v61 }
 0x19f   :  { %1542 = vmatpush3.bf16.msra.mxu1 %v1787_v60  ;;  %1557 = vmatprep.mubr.msk.bf16.mxu1 %vm1845_vm0, %v1844_v39 }
 0x1a0   :  { %1543 = vmatprep.subr.bf16.mxu1 %v1844_v39 }
 0x1a3   :  { %1544 = vmatpush3.bf16.msra.mxu1 %v1788_v12 }
 0x1a4   :  { %1545 = vmatprep.subr.bf16.mxu1 %v1844_v39 }
 0x1a7   :  { %1546 = vmatpush3.bf16.msra.mxu1 %v1789_v62 }
 0x1a8   :  { %1547 = vmatprep.subr.bf16.mxu1 %v1844_v39 }
 0x1ab   :  { %1548 = vmatpush3.bf16.msra.mxu1 %v1790_v63 }
 0x1ac   :  { %1549 = vmatprep.subr.bf16.mxu1 %v1844_v39 }
 0x1af   :  { %1550 = vmatpush3.bf16.msra.mxu1 %v1791_v1 }
 0x1b0   :  { %1551 = vmatprep.subr.bf16.mxu1 %v1844_v39 }
 0x1b3   :  { %1552 = vmatpush3.bf16.msra.mxu1 %v1792_v2 }
 0x1b4   :  { %1553 = vmatprep.subr.bf16.mxu1 %v1844_v39 }
 0x1b7   :  { %1554 = vmatpush3.bf16.msra.mxu1 %v1793_v3 }
 0x1b8   :  { %1555 = vmatprep.subr.bf16.mxu1 %v1844_v39 }
 0x1bb   :  { %1556 = vmatpush3.bf16.msra.mxu1 %v1794_v4 }
 0x271   :  { %v1526_v0 = vpop.f32.mrb[4].mxu1 }
 0x272   :  { %v1527_v6 = vpop.f32.mrb[5].mxu1 }
 0x273   :  { %v1528_v7 = vadd.f32 %v1527_v6, %v1526_v0  ;;  %v1529_v8 = vpop.f32.mrb[6].mxu1 }
 0x274   :  { %v1530_v9 = vpop.f32.mrb[7].mxu1 }
 0x275   :  { %v1208_v10 = vadd.f32 %v1528_v7, %v1484_v5 }
 0x277   :  { %v1213_v11 = vmax.f32 %v1208_v10, 0.0 }
 0x279   :  { %v1214_v13 = vpack.c.bf16 %v1213_v11, %v1213_v11  ;;  %1326 = vst [vmem:[#allocation4] sm:$0x3] %v1213_v11 }
 0x27b   :  { %1558 = vmatmul.mubr.bf16.vlgmr.msra.gmra.mrb[8].mxu1 %v1214_v13 }
 0x27c   :  { %1806 = shalt.err (!%p1803_p4)
}
 0x27d   :  { %s1807_s15 = scalar_lea.hbm %s2426_s8, 32 }
 0x27e   :  { %p1808_p5 = scmp.ne.s32.totalorder %s2426_s8, %s1807_s15  ;;  %p1811_p6 = scmp.lt.u32.totalorder %s1807_s15, %s2426_s8 }
 0x280   :  { %p1813_p7 = pnand %p1811_p6, %p1808_p5 }
 0x282   :  { %1816 = shalt.err (!%p1813_p7)
}
 0x283   :  { %1347 = dma.vmem_to_hbm [thread:$0]  %s1345_s14, 32, %s2426_s8, [#allocation5]   ;;  %v1501_v14 = vld [vmem:[%s2424_s6] ss:$0 sm:$0xff] }
 0x284   :  { %s1847_s22 = smov [#allocation2]  }
 0x285   :  { %s1334_s23 = sshll.u32 %s1847_s22, 4  ;;  %s1335_s23 = int_to_ptr.vmem [resolvable:$true] %s1334_s23 }
 0x286   :  { %s1817_s24 = scalar_lea.vmem %s1335_s23, 32  ;;  %p1822_p9 = scmp.lt.s32.totalorder %s1335_s23, %s1335_s23 }
 0x287   :  { %p1818_p8 = scmp.ne.s32.totalorder %s1335_s23, %s1817_s24  ;;  %p1823_p10 = scmp.lt.s32.totalorder %s1817_s24, %s1817_s24 }
 0x289   :  { %p1824_p11 = por %p1823_p10, %p1822_p9 }
 0x28b   :  { %p1825_p12 = pnand %p1824_p11, %p1818_p8 }
 0x34e   :  { %v1320_v15 = vpop.f32.mrb[8].mxu1 }
 0x34f   :  { %v1321_v16 = vadd.f32 %v1501_v14, %v1320_v15  ;;  %v1559_v17 = vpop.f32.mrb[9].mxu1 }
 0x350   :  { %v1323_v18 = vpop.f32.mrb[10].mxu1 }
 0x351   :  { %1327 = vst [vmem:[#allocation2] sm:$0x3] %v1321_v16  ;;  %v1560_v19 = vpop.f32.mrb[11].mxu1 }
 0x352   :  { %1828 = shalt.err (!%p1825_p12)
}
 0x353   :  { %s1829_s6 = scalar_lea.hbm %s2425_s7, 32 }
 0x354   :  { %p1830_p13 = scmp.ne.s32.totalorder %s2425_s7, %s1829_s6  ;;  %p1833_p0 = scmp.lt.u32.totalorder %s1829_s6, %s2425_s7 }
 0x356   :  { %p1835_p1 = pnand %p1833_p0, %p1830_p13 }
 0x358   :  { %1838 = shalt.err (!%p1835_p1)
}
 0x359   :  { %1337 = dma.vmem_to_hbm [thread:$0]  %s1335_s23, 32, %s2425_s7, [#allocation3]  }
 0x35a   :  { %1839 = dma.done.wait [#allocation3], 32  }
 0x35b   :  { %1840 = vsyncadd [#allocation3], 4294967264 }
 0x35c   :  { %1841 = dma.done.wait [#allocation5], 32  }
 0x35d   :  { %1842 = vsyncadd [#allocation5], 4294967264 }
 0x35e   :  { %1354 = vsyncpa [#allocation3], 1 }
 0x35f   :  { %1355 = vsyncpa [#allocation5], 1 }

</bundles_post_ra>
